<compile_context>
chip_gen: v5e
topology: v5e:2x2
jax: 0.10.0
libtpu: 0.0.40
codegen_flags: <defaults>
</compile_context>

<pallas_src>
import functools

import jax
import jax.numpy as jnp
from jax import lax
from jax.experimental import pallas as pl
from jax.experimental.pallas import tpu as pltpu


def _loc_symp_kernel(x_ref, tau_ref, Wt_ref, b_ref, u_ref, eh_ref, o_ref,
                     *, sigma, flatten):
    # x_ref:   (Bt, S, d)  block of X
    # tau_ref: (Bt, S, S)  block of tau
    # Wt_ref:  (d, m)      W_pad.T  (zero row at k2-1; contraction on rhs dim 0)
    # b_ref:   (1, m)      bias
    # u_ref:   (1, m)      (w * W[:, k1-1:k1]).T   (batch independent)
    # eh_ref:  (1, 1, d)   one-hot at column k2-1 (for the single full-tile store)
    # o_ref:   (Bt, S, d)  X block with column k2-1 updated
    x = x_ref[...]                                   # (Bt, S, d)
    bt, S, d = x.shape

    if flatten:
        # Free relayout only when S % 8 == 0 (guarded in the wrapper).
        h = lax.dot_general(x.reshape(bt * S, d), Wt_ref[...],
                            (((1,), (0,)), ((), ())),
                            preferred_element_type=jnp.float32)    # (Bt*S, m)
        h = h.reshape(bt, S, -1)                                   # (Bt, S, m)
    else:
        h = jnp.einsum('bsd,dm->bsm', x, Wt_ref[...],
                       preferred_element_type=jnp.float32)         # (Bt, S, m)

    # f = sigma(y @ W.T + b) == sigma(X @ W_pad.T + b)
    f = sigma(h + b_ref[...])                                      # (Bt, S, m)

    # g = f @ (w * W[:, k1-1:k1])  -> VPU multiply + lane reduction (no N=1 MXU op)
    g = jnp.sum(f * u_ref[...], axis=-1)                           # (Bt, S)

    # delta = tau @ g  -> VPU multiply + cross-lane reduction
    delta = jnp.sum(tau_ref[...] * g[:, None, :], axis=-1,
                    keepdims=True)                                 # (Bt, S, 1)

    # Single unmasked full-tile store (no copy-through + masked column store).
    o_ref[...] = x - delta.astype(x.dtype) * eh_ref[...]


def _plan(B, S, d, m, itemsize=4):
    """Pick the batch block size and vmem limit, generation-aware and
    (8,128)-padding-aware."""
    r8 = lambda v: ((v + 7) // 8) * 8          # sublane padding
    rl = lambda v: ((v + 127) // 128) * 128    # lane padding

    vmem_cap = 128 * 1024 * 1024
    try:
        info = pltpu.get_tpu_info()
        vmem_cap = int(getattr(info, "vmem_capacity_bytes", vmem_cap))
    except Exception:
        pass
    two_tc = vmem_cap <= 64 * 1024 * 1024      # v7x: 64 MiB per TC, 2 TCs/chip
    if two_tc:
        block_budget = 24 * 1024 * 1024
        vmem_limit = 40 * 1024 * 1024
    else:                                      # v5e / v6e: 128 MiB VMEM, 1 TC
        block_budget = 56 * 1024 * 1024
        vmem_limit = 96 * 1024 * 1024

    Sp, Sl, dl, ml = r8(S), rl(S), rl(d), rl(m)
    # Per batch-row cost in (8,128)-padded f32:
    #   double-buffered pipeline blocks: tau (Sp,Sl) + X in (Sp,dl) + X out (Sp,dl)
    blocks = 2 * (Sp * Sl + 2 * Sp * dl) * itemsize
    #   single-buffered intermediates: h & f (Sp,ml each), delta (Sp,128), out tile
    inter = (2 * Sp * ml + Sp * 128 + Sp * dl) * itemsize
    per_batch = blocks + inter
    # Small replicated operands (Wt, b, u, onehot), double-buffered.
    fixed = 2 * (r8(d) * ml + 2 * 8 * ml + 8 * dl) * itemsize

    bt = max(1, (block_budget - fixed) // max(per_batch, 1))
    bt = int(min(bt, B))
    if two_tc and B > 1:
        # Aim for >= 4 near-equal steps so both TensorCores stay busy and the
        # tau DMA pipeline has something to overlap with.
        steps = max(pl.cdiv(B, bt), min(B, 4))
        bt = int(pl.cdiv(B, steps))
    return max(1, bt), vmem_limit


def loc_symp_forward(X, tau, W, w, b, *, k1, k2, sigma=jnp.tanh, block_b=None):
    """Pallas implementation of LocSympModule_Low.forward. Returns (X_new, tau).

    NOTE: X is donated to the output via input_output_aliases; copy first if
    the original X is still needed by the caller.
    """
    B, S, d = X.shape
    m = W.shape[0]
    assert W.shape == (m, d - 1) and w.shape == (m, 1) and b.shape == (1, m)
    assert tau.shape == (B, S, S)

    # W_pad: zero column inserted at k2-1 so X @ W_pad.T == y @ W.T exactly,
    # then pre-transposed to (d, m) so the kernel contracts on its leading dim.
    Wp = jnp.concatenate(
        [W[:, :k2 - 1], jnp.zeros((m, 1), W.dtype), W[:, k2 - 1:]], axis=1)  # (m, d)
    Wt = Wp.T                                                                # (d, m)
    # Batch-independent right factor of the second matmul, as a row vector.
    u_row = (w * W[:, k1 - 1:k1]).T                                          # (1, m)
    # One-hot column selector for the single full-tile output store.
    onehot = jnp.zeros((1, 1, d), X.dtype).at[0, 0, k2 - 1].set(1)           # (1, 1, d)

    bt_auto, vmem_limit = _plan(B, S, d, m, itemsize=X.dtype.itemsize)
    bt = block_b if block_b is not None else bt_auto
    grid = (pl.cdiv(B, bt),)

    kernel = functools.partial(_loc_symp_kernel, sigma=sigma,
                               flatten=(S % 8 == 0))

    X_new = pl.pallas_call(
        kernel,
        out_shape=jax.ShapeDtypeStruct((B, S, d), X.dtype),
        grid=grid,
        in_specs=[
            pl.BlockSpec((bt, S, d), lambda g: (g, 0, 0)),    # X block
            pl.BlockSpec((bt, S, S), lambda g: (g, 0, 0)),    # tau block
            pl.BlockSpec((d, m), lambda g: (0, 0)),           # Wt     (replicated)
            pl.BlockSpec((1, m), lambda g: (0, 0)),           # b      (replicated)
            pl.BlockSpec((1, m), lambda g: (0, 0)),           # u_row  (replicated)
            pl.BlockSpec((1, 1, d), lambda g: (0, 0, 0)),     # onehot (replicated)
        ],
        out_specs=pl.BlockSpec((bt, S, d), lambda g: (g, 0, 0)),
        input_output_aliases={0: 0},          # X_new aliases X (no extra buffer)
        compiler_params=pltpu.CompilerParams(
            dimension_semantics=("parallel",),
            vmem_limit_bytes=vmem_limit),
    )(X, tau, Wt, b, u_row, onehot)

    # TODO(synk): if d is not small relative to S, output only the updated
    # column (lane-dense (B, S)) and scatter in the wrapper to skip the
    # mostly-unchanged X write-back.
    return X_new, tau


def _reference(X, tau, W, w, b, *, k1, k2, sigma=jnp.tanh):
    """Pure-JAX mirror of the PyTorch forward (functional, no in-place mutation)."""
    d = X.shape[-1]
    cols = jnp.array([i for i in range(d) if i != k2 - 1], dtype=jnp.int32)
    y = X[:, :, cols]
    f = sigma(jnp.matmul(y, W.T) + b)
    f = jnp.matmul(f, w * W[:, k1 - 1:k1])
    X_new = X.at[:, :, k2 - 1:k2].add(-jnp.matmul(tau, f))
    return X_new, tau


if __name__ == "__main__":
    # Module hyperparameters (L is unused in forward).
    d, k1, k2, m, L, sqrt_var = 8, 3, 5, 16, 1, 0.1
    sigma = jnp.tanh          # the module's `sigma` activation; demo uses tanh
    B, S = 2, 8

    key = jax.random.PRNGKey(0)
    kW, kw, kX, kT = jax.random.split(key, 4)

    W = sqrt_var * jax.random.normal(kW, (m, d - 1), dtype=jnp.float32)
    w = sqrt_var * jax.random.normal(kw, (m, 1), dtype=jnp.float32)
    b = jnp.zeros((1, m), dtype=jnp.float32)    # spec: bias initialized to zeros

    X = jax.random.normal(kX, (B, S, d), dtype=jnp.float32)
    tau = 0.05 * jax.random.normal(kT, (B, S, S), dtype=jnp.float32)

    # Compute the reference first (the kernel's X output aliases the X input).
    X_ref, tau_ref = _reference(X, tau, W, w, b, k1=k1, k2=k2, sigma=sigma)

    X_out, tau_out = loc_symp_forward(X, tau, W, w, b, k1=k1, k2=k2, sigma=sigma)
    jax.block_until_ready(X_out)
    jax.block_until_ready(tau_out)

    assert jnp.allclose(X_out, X_ref, atol=1e-5, rtol=1e-5), "mismatch vs reference"
    assert jnp.array_equal(tau_out, tau_ref)

    print("KERNEL_OK")
</pallas_src>

<mosaic_0001>
module attributes {stable_mosaic.version = 11 : i64} {
  func.func @_loc_symp_kernel(%arg0: i32, %arg1: memref<2x8x8xf32, #tpu.memory_space<vmem>>, %arg2: memref<2x8x8xf32, #tpu.memory_space<vmem>>, %arg3: memref<8x16xf32, #tpu.memory_space<vmem>>, %arg4: memref<1x16xf32, #tpu.memory_space<vmem>>, %arg5: memref<1x16xf32, #tpu.memory_space<vmem>>, %arg6: memref<1x1x8xf32, #tpu.memory_space<vmem>>, %arg7: memref<2x8x8xf32, #tpu.memory_space<vmem>>) attributes {dimension_semantics = [#tpu.dimension_semantics<parallel>], iteration_bounds = array<i64: 1>, scalar_prefetch = 0 : i64, scratch_operands = 0 : i64, tpu.core_type = #tpu.core_type<tc>, window_params = [{transform_indices = @transform_0, window_bounds = array<i64: 2, 8, 8>}, {transform_indices = @transform_1, window_bounds = array<i64: 2, 8, 8>}, {pipeline_mode = #tpu.pipeline_mode<synchronous>, transform_indices = @transform_2, window_bounds = array<i64: 8, 16>}, {pipeline_mode = #tpu.pipeline_mode<synchronous>, transform_indices = @transform_3, window_bounds = array<i64: 1, 16>}, {pipeline_mode = #tpu.pipeline_mode<synchronous>, transform_indices = @transform_4, window_bounds = array<i64: 1, 16>}, {pipeline_mode = #tpu.pipeline_mode<synchronous>, transform_indices = @transform_5, window_bounds = array<i64: 1, 1, 8>}, {transform_indices = @transform_6, window_bounds = array<i64: 2, 8, 8>}]} {
    %c0 = arith.constant 0 : index
    %c0_0 = arith.constant 0 : index
    %c0_1 = arith.constant 0 : index
    %0 = vector.load %arg1[%c0, %c0_0, %c0_1] : memref<2x8x8xf32, #tpu.memory_space<vmem>>, vector<2x8x8xf32>
    %1 = vector.shape_cast %0 : vector<2x8x8xf32> to vector<16x8xf32>
    %c0_2 = arith.constant 0 : index
    %c0_3 = arith.constant 0 : index
    %2 = vector.load %arg3[%c0_2, %c0_3] : memref<8x16xf32, #tpu.memory_space<vmem>>, vector<8x16xf32>
    %cst = arith.constant dense<0.000000e+00> : vector<16x16xf32>
    %3 = tpu.matmul %1, %2, %cst {dimension_numbers = #tpu.dot_dimension_numbers<[1], [0], [0], [1], [0, 0, 1, 1], [], []>} : vector<16x8xf32>, vector<8x16xf32>, vector<16x16xf32> -> vector<16x16xf32>
    %4 = vector.shape_cast %3 : vector<16x16xf32> to vector<2x8x16xf32>
    %c0_4 = arith.constant 0 : index
    %c0_5 = arith.constant 0 : index
    %5 = vector.load %arg4[%c0_4, %c0_5] : memref<1x16xf32, #tpu.memory_space<vmem>>, vector<1x16xf32>
    %6 = vector.shape_cast %5 : vector<1x16xf32> to vector<1x1x16xf32>
    %7 = vector.broadcast %6 : vector<1x1x16xf32> to vector<2x8x16xf32>
    %8 = arith.addf %4, %7 : vector<2x8x16xf32>
    %9 = math.tanh %8 : vector<2x8x16xf32>
    %c0_6 = arith.constant 0 : index
    %c0_7 = arith.constant 0 : index
    %10 = vector.load %arg5[%c0_6, %c0_7] : memref<1x16xf32, #tpu.memory_space<vmem>>, vector<1x16xf32>
    %11 = vector.shape_cast %10 : vector<1x16xf32> to vector<1x1x16xf32>
    %12 = vector.broadcast %11 : vector<1x1x16xf32> to vector<2x8x16xf32>
    %13 = arith.mulf %9, %12 : vector<2x8x16xf32>
    %cst_8 = arith.constant dense<0.000000e+00> : vector<2x8xf32>
    %14 = vector.multi_reduction <add>, %13, %cst_8 [2] : vector<2x8x16xf32> to vector<2x8xf32>
    %c0_9 = arith.constant 0 : index
    %c0_10 = arith.constant 0 : index
    %c0_11 = arith.constant 0 : index
    %15 = vector.load %arg2[%c0_9, %c0_10, %c0_11] : memref<2x8x8xf32, #tpu.memory_space<vmem>>, vector<2x8x8xf32>
    %16 = vector.shape_cast %14 : vector<2x8xf32> to vector<2x1x8xf32>
    %17 = vector.broadcast %16 : vector<2x1x8xf32> to vector<2x8x8xf32>
    %18 = arith.mulf %15, %17 : vector<2x8x8xf32>
    %cst_12 = arith.constant dense<0.000000e+00> : vector<2x8xf32>
    %19 = vector.multi_reduction <add>, %18, %cst_12 [2] : vector<2x8x8xf32> to vector<2x8xf32>
    %20 = vector.shape_cast %19 : vector<2x8xf32> to vector<2x8x1xf32>
    %c0_13 = arith.constant 0 : index
    %c0_14 = arith.constant 0 : index
    %c0_15 = arith.constant 0 : index
    %21 = vector.load %arg6[%c0_13, %c0_14, %c0_15] : memref<1x1x8xf32, #tpu.memory_space<vmem>>, vector<1x1x8xf32>
    %22 = vector.broadcast %20 : vector<2x8x1xf32> to vector<2x8x8xf32>
    %23 = vector.broadcast %21 : vector<1x1x8xf32> to vector<2x8x8xf32>
    %24 = arith.mulf %22, %23 : vector<2x8x8xf32>
    %25 = arith.subf %0, %24 : vector<2x8x8xf32>
    %c0_16 = arith.constant 0 : index
    %c0_17 = arith.constant 0 : index
    %c0_18 = arith.constant 0 : index
    %26 = vector.load %arg7[%c0_16, %c0_17, %c0_18] : memref<2x8x8xf32, #tpu.memory_space<vmem>>, vector<2x8x8xf32>
    tpu.vector_store %arg7[%c0_16, %c0_17, %c0_18], %25 {strides = array<i32>} : memref<2x8x8xf32, #tpu.memory_space<vmem>>, vector<2x8x8xf32>,
    return
  }
  func.func @transform_0(%arg0: i32) -> (i32, i32, i32) {
    %c0_i32 = arith.constant 0 : i32
    %c0_i32_0 = arith.constant 0 : i32
    %c0_i32_1 = arith.constant 0 : i32
    return %arg0, %c0_i32, %c0_i32_0 : i32, i32, i32
  }
  func.func @transform_1(%arg0: i32) -> (i32, i32, i32) {
    %c0_i32 = arith.constant 0 : i32
    %c0_i32_0 = arith.constant 0 : i32
    %c0_i32_1 = arith.constant 0 : i32
    return %arg0, %c0_i32, %c0_i32_0 : i32, i32, i32
  }
  func.func @transform_2(%arg0: i32) -> (i32, i32) {
    %c0_i32 = arith.constant 0 : i32
    %c0_i32_0 = arith.constant 0 : i32
    %c0_i32_1 = arith.constant 0 : i32
    return %c0_i32, %c0_i32_0 : i32, i32
  }
  func.func @transform_3(%arg0: i32) -> (i32, i32) {
    %c0_i32 = arith.constant 0 : i32
    %c0_i32_0 = arith.constant 0 : i32
    %c0_i32_1 = arith.constant 0 : i32
    return %c0_i32, %c0_i32_0 : i32, i32
  }
  func.func @transform_4(%arg0: i32) -> (i32, i32) {
    %c0_i32 = arith.constant 0 : i32
    %c0_i32_0 = arith.constant 0 : i32
    %c0_i32_1 = arith.constant 0 : i32
    return %c0_i32, %c0_i32_0 : i32, i32
  }
  func.func @transform_5(%arg0: i32) -> (i32, i32, i32) {
    %c0_i32 = arith.constant 0 : i32
    %c0_i32_0 = arith.constant 0 : i32
    %c0_i32_1 = arith.constant 0 : i32
    %c0_i32_2 = arith.constant 0 : i32
    return %c0_i32, %c0_i32_0, %c0_i32_1 : i32, i32, i32
  }
  func.func @transform_6(%arg0: i32) -> (i32, i32, i32) {
    %c0_i32 = arith.constant 0 : i32
    %c0_i32_0 = arith.constant 0 : i32
    %c0_i32_1 = arith.constant 0 : i32
    return %arg0, %c0_i32, %c0_i32_0 : i32, i32, i32
  }
}

</mosaic_0001>

<bundles_post_ra>
// kernel: tpu_custom_call.1
= control target key start
LH: loop header
LB: loop body
LE: loop exit
PB: predicated region body
PF: predicated region fallthrough
CT: control target
= control target key end

     0   :  { %11 = vsyncpa [#allocation3], 0  ;;  %s300_s0 = inlined_call_operand.hbm [shape: f32[2,8,8], index: 0, kind: input, shape index: {}, may-alias: {0,6}]   ;;  %s301_s1 = inlined_call_operand.vmem [shape: f32[2,8,8], index: 1, kind: input, shape index: {}]   ;;  %s302_s2 = inlined_call_operand.vmem [shape: f32[8,16], index: 2, kind: input, shape index: {}]   ;;  %s303_s3 = inlined_call_operand.vmem [shape: f32[1,16], index: 3, kind: input, shape index: {}]   ;;  %s304_s4 = inlined_call_operand.vmem [shape: f32[1,16], index: 4, kind: input, shape index: {}]   ;;  %s305_s5 = inlined_call_operand.vmem [shape: f32[1,1,8], index: 5, kind: input, shape index: {}]   ;;  %s306_s6 = inlined_call_operand.hbm [shape: f32[2,8,8], index: 6, kind: output, shape index: {}, may-alias: {0,6}]  }
   0x1   :  { %12 = vsyncpa [#allocation4], 0  ;;  %s17_s23 = sshll.u32 %s300_s0, 4  ;;  %s225_s24 = smov [#allocation2]   ;;  %s18_s23 = int_to_ptr.hbm [resolvable:$true] %s17_s23 }
   0x2   :  { %s19_s25 = sshll.u32 %s225_s24, 4  ;;  %s226_s26 = smov 128   ;;  %s20_s25 = int_to_ptr.vmem [resolvable:$true] %s19_s25 }
   0x3   :  { %s227_s27 = smov 8  }
   0x4   :  { %25 = dma.hbm_to_vmem [thread:$0]  %s18_s23, 256, %s20_s25, [#allocation3], %s226_s26, %s226_s26, %s227_s27  }
   0x5   :  { %221 = dma.done.wait [#allocation3], 256  }
   0x6   :  { %222 = vsyncadd [#allocation3], 4294967040  ;;  %vm43_vm0 = vcmask 64512   ;;  %v42_v0 = vld [vmem:[%s302_s2] sm:$0xff]  ;;  %v41_v2 = vld [vmem:[#allocation2 + $0x8] sm:$0xff]  ;;  %vm87_vm1 = vcmask 130048   ;;  %v98_v15 = vlaneseq }
   0x7   :  { %v40_v1 = vld [vmem:[#allocation2] sm:$0xff]  ;;  %65 = vmatpush.msra.mxu0 %v42_v0  ;;  %161 = vmatpush.msra.mxu1 %v42_v0  ;;  %v95_v23 = vld [vmem:[%s301_s1 + $0x8] sm:$0xff]  ;;  %s228_s12 = smov [#allocation5]  }
   0x8   :  { %159 = vmatmul.msk.f32.vlgmr.msra.gmra.mxu0 %vm43_vm0, %v40_v1  ;;  %160 = vmatmul.msk.f32.vlgmr.msra.gmra.mxu1 %vm43_vm0, %v41_v2  ;;  %v166_v3 = vld [vmem:[%s303_s3] ss:$0 sm:$0xff]  ;;  %v99_v16 = vand.u32 127, %v98_v15  ;;  %s144_s13 = sshll.u32 %s228_s12, 4  ;;  %s145_s13 = int_to_ptr.vmem [resolvable:$true] %s144_s13 }
   0x9   :  { %v167_v8 = vld [vmem:[%s304_s4] ss:$0 sm:$0xff] }
   0xa   :  { %v94_v18 = vld [vmem:[%s301_s1] sm:$0xff]  ;;  %s146_s1 = sshll.u32 %s306_s6, 4  ;;  %s147_s1 = int_to_ptr.hbm [resolvable:$true] %s146_s1 }
   0xb   :  { %v168_v27 = vld [vmem:[%s305_s5] ss:$0 sm:$0xff] }
  0x85   :  { %v67_v4 = vpop.f32.mrf.mxu0  ;;  %v70_v5 = vpop.f32.mrf.mxu1 }
  0x86   :  { %v77_v6 = vadd.f32 %v166_v3, %v67_v4  ;;  %v78_v7 = vadd.f32 %v166_v3, %v70_v5 }
  0x88   :  { %169 = vtanh.f32 %v77_v6 }
  0x89   :  { %171 = vtanh.f32 %v78_v7 }
  0x8e   :  { %v170_v9 = vpop.eup %169 }
  0x8f   :  { %v85_v10 = vmul.f32 %v170_v9, %v167_v8  ;;  %v172_v11 = vpop.eup %171 }
  0x90   :  { %v86_v13 = vmul.f32 %v172_v11, %v167_v8 }
  0x91   :  { %v88_v12 = vsel %vm87_vm1, %v85_v10, 0.0 }
  0x92   :  { %89 = vadd.xlane.f32.xlu0 %v88_v12  ;;  %v91_v14 = vsel %vm87_vm1, %v86_v13, 0.0 }
  0x9a   :  { %92 = vadd.xlane.f32.xlu0 %v91_v14 }
 0x105   :  { %v90_v17 = vpop.xlane.xlu0 %89 }
 0x106   :  { %v100_v19 = vperm.slane %v90_v17, %v99_v16 }
 0x108   :  { %v122_v20 = vmul.f32 %v100_v19, %v94_v18 }
 0x10a   :  { %v124_v21 = vsel %vm43_vm0, %v122_v20, 0.0 }
 0x10b   :  { %125 = vadd.xlane.f32.xlu1 %v124_v21 }
 0x10d   :  { %v93_v22 = vpop.xlane.xlu0 %92 }
 0x10e   :  { %v101_v24 = vperm.slane %v93_v22, %v99_v16 }
 0x110   :  { %v123_v25 = vmul.f32 %v101_v24, %v95_v23 }
 0x112   :  { %v127_v26 = vsel %vm43_vm0, %v123_v25, 0.0 }
 0x113   :  { %128 = vadd.xlane.f32.xlu1 %v127_v26 }
 0x17e   :  { %v126_v28 = vpop.xlane.xlu1 %125 }
 0x17f   :  { %v134_v29 = vmul.f32 %v168_v27, %v126_v28 }
 0x181   :  { %v136_v30 = vsub.f32 %v40_v1, %v134_v29 }
 0x183   :  { %138 = vst.msk [vmem:[#allocation5] sm:$0xff] %vm43_vm0, %v136_v30 }
 0x186   :  { %v129_v31 = vpop.xlane.xlu1 %128 }
 0x187   :  { %v135_v32 = vmul.f32 %v168_v27, %v129_v31 }
 0x189   :  { %v137_v33 = vsub.f32 %v41_v2, %v135_v32 }
 0x18b   :  { %139 = vst.msk [vmem:[#allocation5 + $0x8] sm:$0xff] %vm43_vm0, %v137_v33 }
 0x18c   :  { %152 = dma.vmem_to_hbm [thread:$0]  %s145_s13, 256, %s147_s1, [#allocation4], %s226_s26, %s226_s26, %s227_s27  }
 0x18d   :  { %223 = dma.done.wait [#allocation4], 256  }
 0x18e   :  { %224 = vsyncadd [#allocation4], 4294967040 }
 0x18f   :  { %157 = vsyncpa [#allocation3], 1 }
 0x190   :  { %158 = vsyncpa [#allocation4], 1 }

</bundles_post_ra>
